<compile_context>
chip_gen: v7x
topology: tpu7x:2x2x1
jax: 0.10.0
libtpu: 0.0.40
codegen_flags: <defaults>
</compile_context>

<pallas_src>
from functools import partial

import jax
import jax.numpy as jnp
from jax.experimental import pallas as pl
from jax.experimental.pallas import tpu as pltpu

EPS = 1e-6
NUM_GROUPS = 32
VMEM_LIMIT = 48 * 1024 * 1024   # leave headroom under v7x's 64 MiB physical VMEM


def _pick_tile(n, preferred):
    """Largest 128-multiple tile (<= preferred) dividing n, else the full extent."""
    for t in (preferred, 512, 256, 128):
        if t <= n and n % t == 0:
            return t
    # TODO(synk): add a masked path for ragged HW instead of falling back to a full block.
    return n


# ---------------------------------------------------------------------------
# kernel 1a: GroupNorm statistics (per-channel sum / sum-of-squares over HW)
# ---------------------------------------------------------------------------
def _gn_stats_kernel(x_ref, s_ref):
    @pl.when(pl.program_id(1) == 0)
    def _():
        s_ref[...] = jnp.zeros_like(s_ref)

    x = x_ref[...].astype(jnp.float32)                    # (C, Ts) channels-first
    cs = jnp.sum(x, axis=1, keepdims=True)                # (C, 1)
    csq = jnp.sum(x * x, axis=1, keepdims=True)           # (C, 1)
    s_ref[...] += jnp.concatenate([cs, csq], axis=1)      # (C, 2) resident accumulator


def gn_stats_pallas(x_cf, ts):
    Bn, C, HW = x_cf.shape
    return pl.pallas_call(
        _gn_stats_kernel,
        out_shape=jax.ShapeDtypeStruct((Bn, C, 2), jnp.float32),
        grid=(Bn, HW // ts),
        in_specs=[pl.BlockSpec((None, C, ts), lambda b, t: (b, 0, t))],
        out_specs=pl.BlockSpec((None, C, 2), lambda b, t: (b, 0, 0)),
        compiler_params=pltpu.CompilerParams(
            dimension_semantics=("parallel", "arbitrary"),
            vmem_limit_bytes=VMEM_LIMIT),
    )(x_cf)


# ---------------------------------------------------------------------------
# kernel 1b: GroupNorm apply + fused q/k/v projection (per HW tile)
# ---------------------------------------------------------------------------
def _gn_qkv_kernel(x_ref, s_ref, p_ref, g_ref, b_ref, wqkv_ref, bqkv_ref,
                   q_ref, kT_ref, v_ref, *, C):
    x = x_ref[...].astype(jnp.float32)                    # (C, Ts) channels-first

    # per-channel group mean / mean-of-squares via the precomputed (C,C) group-
    # averaging matrix P (P[i,j] = [same group]/(HW*cg)) applied to the stats.
    ms = jnp.dot(p_ref[...], s_ref[...], preferred_element_type=jnp.float32)   # (C, 2)
    mean = ms[:, 0:1]
    var = jnp.maximum(ms[:, 1:2] - mean * mean, 0.0)      # E[x^2]-E[x]^2, clamped
    inv = jax.lax.rsqrt(var + EPS)
    h = (x - mean) * (inv * g_ref[...]) + b_ref[...]      # (C, Ts)

    # one bf16 XLU transpose per tile, then a single fused (Ts,C)@(C,3C) MXU matmul
    hT = h.astype(jnp.bfloat16).T                         # (Ts, C)
    out = jnp.dot(hT, wqkv_ref[...], preferred_element_type=jnp.float32) + bqkv_ref[...]

    q_ref[...] = out[:, :C].astype(q_ref.dtype)                 # q (scale pre-folded)
    kT_ref[...] = out[:, C:2 * C].astype(jnp.bfloat16).T        # cast bf16 *before* transpose
    v_ref[...] = out[:, 2 * C:].astype(v_ref.dtype)


def gn_qkv_pallas(x_cf, stats, pmat, gcf, bcf, wqkv, bqkv, ts):
    Bn, C, HW = x_cf.shape
    return pl.pallas_call(
        partial(_gn_qkv_kernel, C=C),
        out_shape=(jax.ShapeDtypeStruct((Bn, HW, C), jnp.bfloat16),
                   jax.ShapeDtypeStruct((Bn, C, HW), jnp.bfloat16),
                   jax.ShapeDtypeStruct((Bn, HW, C), jnp.bfloat16)),
        grid=(Bn, HW // ts),
        in_specs=[
            pl.BlockSpec((None, C, ts), lambda b, t: (b, 0, t)),   # x (NCHW, lane = HW tile)
            pl.BlockSpec((None, C, 2), lambda b, t: (b, 0, 0)),    # per-batch GN stats
            pl.BlockSpec((C, C), lambda b, t: (0, 0)),             # group-averaging matrix
            pl.BlockSpec((C, 1), lambda b, t: (0, 0)),             # gamma (channels-first)
            pl.BlockSpec((C, 1), lambda b, t: (0, 0)),             # beta
            pl.BlockSpec((C, 3 * C), lambda b, t: (0, 0)),         # fused qkv weight (bf16)
            pl.BlockSpec((1, 3 * C), lambda b, t: (0, 0)),         # fused qkv bias (f32)
        ],
        out_specs=(pl.BlockSpec((None, ts, C), lambda b, t: (b, t, 0)),   # q
                   pl.BlockSpec((None, C, ts), lambda b, t: (b, 0, t)),   # kT
                   pl.BlockSpec((None, ts, C), lambda b, t: (b, t, 0))),  # v
        compiler_params=pltpu.CompilerParams(
            dimension_semantics=("parallel", "parallel"),
            vmem_limit_bytes=VMEM_LIMIT),
    )(x_cf, stats, pmat, gcf, bcf, wqkv, bqkv)


# ---------------------------------------------------------------------------
# kernel 2: flash attention (online softmax) + proj_out + residual, NCHW output
# ---------------------------------------------------------------------------
def _flash_proj_kernel(x_ref, q_ref, kT_ref, v_ref, wpT_ref, bp_ref, o_ref,
                       m_sc, l_sc, acc_sc):
    ki = pl.program_id(2)

    @pl.when(ki == 0)
    def _():
        m_sc[...] = jnp.full(m_sc.shape, -jnp.inf, m_sc.dtype)
        l_sc[...] = jnp.zeros(l_sc.shape, l_sc.dtype)
        acc_sc[...] = jnp.zeros(acc_sc.shape, acc_sc.dtype)

    # q already carries the C**-0.5 scale; kT is (C, TK) so this is a plain MXU matmul.
    s = jnp.dot(q_ref[...], kT_ref[...], preferred_element_type=jnp.float32)   # (TQ, TK)

    m_prev = m_sc[...]
    m_new = jnp.maximum(m_prev, jnp.max(s, axis=-1, keepdims=True))
    alpha = jnp.exp(m_prev - m_new)
    pmat = jnp.exp(s - m_new)
    l_sc[...] = alpha * l_sc[...] + jnp.sum(pmat, axis=-1, keepdims=True)
    acc_sc[...] = alpha * acc_sc[...] + jnp.dot(
        pmat.astype(jnp.bfloat16), v_ref[...], preferred_element_type=jnp.float32)
    m_sc[...] = m_new

    @pl.when(ki == pl.num_programs(2) - 1)
    def _():
        attn = acc_sc[...] * pl.reciprocal(l_sc[...], approx=True)      # (TQ, C) f32
        attn_cf = attn.astype(jnp.bfloat16).T                           # (C, TQ) bf16 (XLU)
        proj = jnp.dot(wpT_ref[...], attn_cf,
                       preferred_element_type=jnp.float32)              # (C, TQ)
        o_ref[...] = (x_ref[...].astype(jnp.float32) + proj
                      + bp_ref[...]).astype(o_ref.dtype)


def flash_attn_proj_pallas(x_cf, q, kT, v, wpT, bp_cf, *, tq, tk):
    Bn, C, HW = x_cf.shape
    return pl.pallas_call(
        _flash_proj_kernel,
        out_shape=jax.ShapeDtypeStruct((Bn, C, HW), x_cf.dtype),
        grid=(Bn, HW // tq, HW // tk),
        in_specs=[
            pl.BlockSpec((None, C, tq), lambda b, qi, ki: (b, 0, qi)),   # x residual (NCHW)
            pl.BlockSpec((None, tq, C), lambda b, qi, ki: (b, qi, 0)),   # q (bf16, pre-scaled)
            pl.BlockSpec((None, C, tk), lambda b, qi, ki: (b, 0, ki)),   # kT (bf16)
            pl.BlockSpec((None, tk, C), lambda b, qi, ki: (b, ki, 0)),   # v (bf16)
            pl.BlockSpec((C, C), lambda b, qi, ki: (0, 0)),              # Wp^T (bf16)
            pl.BlockSpec((C, 1), lambda b, qi, ki: (0, 0)),              # proj bias (C,1) f32
        ],
        out_specs=pl.BlockSpec((None, C, tq), lambda b, qi, ki: (b, 0, qi)),
        scratch_shapes=[pltpu.VMEM((tq, 1), jnp.float32),    # running max
                        pltpu.VMEM((tq, 1), jnp.float32),    # running denom
                        pltpu.VMEM((tq, C), jnp.float32)],   # output accumulator
        compiler_params=pltpu.CompilerParams(
            dimension_semantics=("parallel", "parallel", "arbitrary"),
            vmem_limit_bytes=VMEM_LIMIT),
    )(x_cf, q, kT, v, wpT, bp_cf)


# ---------------------------------------------------------------------------
# AttnBlock forward (NCHW in / NCHW out, matches the PyTorch module)
# ---------------------------------------------------------------------------
def attn_block_pallas(x_nchw, p):
    Bn, C, H, W = x_nchw.shape
    HW = H * W
    assert C % NUM_GROUPS == 0
    x_cf = x_nchw.reshape(Bn, C, HW)             # NCHW flatten: free, no transpose

    ts = _pick_tile(HW, 512)                     # GN / QKV HW tile
    tq = _pick_tile(HW, 256)                     # attention q tile (256-wide MXU native)
    tk = _pick_tile(HW, 256)                     # attention kv tile

    # --- tiny host/XLA-side parameter prep (once per call, negligible) ---
    scale = float(C) ** (-0.5)
    wqkv = jnp.concatenate([p['q']['w'] * scale, p['k']['w'], p['v']['w']],
                           axis=1).astype(jnp.bfloat16)                    # (C, 3C)
    bqkv = jnp.concatenate([p['q']['b'] * scale, p['k']['b'], p['v']['b']],
                           axis=1).astype(jnp.float32)                     # (1, 3C)
    gcf = p['norm']['g'].reshape(C, 1)
    bcf = p['norm']['b'].reshape(C, 1)
    wpT = p['proj']['w'].T.astype(jnp.bfloat16)                            # (Cout, Cin)
    bp_cf = p['proj']['b'].reshape(C, 1)

    cg = C // NUM_GROUPS
    gids = jnp.arange(C, dtype=jnp.int32) // cg
    pmat = (gids[:, None] == gids[None, :]).astype(jnp.float32) / float(HW * cg)  # (C, C)

    stats = gn_stats_pallas(x_cf, ts)
    q, kT, v = gn_qkv_pallas(x_cf, stats, pmat, gcf, bcf, wqkv, bqkv, ts)
    out_cf = flash_attn_proj_pallas(x_cf, q, kT, v, wpT, bp_cf, tq=tq, tk=tk)
    return out_cf.reshape(Bn, C, H, W)


# ---------------------------------------------------------------------------
# pure-JAX f32 reference (same params / layouts) for the correctness check
# ---------------------------------------------------------------------------
def attn_block_ref(x_nchw, p):
    Bn, C, H, W = x_nchw.shape
    x = jnp.transpose(x_nchw, (0, 2, 3, 1)).reshape(Bn, H * W, C)
    xg = x.reshape(Bn, H * W, NUM_GROUPS, C // NUM_GROUPS)
    mean = xg.mean(axis=(1, 3), keepdims=True)
    var = ((xg - mean) ** 2).mean(axis=(1, 3), keepdims=True)
    h = ((xg - mean) * jax.lax.rsqrt(var + EPS)).reshape(Bn, H * W, C)
    h = h * p['norm']['g'] + p['norm']['b']
    q = h @ p['q']['w'] + p['q']['b']
    k = h @ p['k']['w'] + p['k']['b']
    v = h @ p['v']['w'] + p['v']['b']
    att = jnp.einsum('bic,bjc->bij', q, k) * (float(C) ** (-0.5))
    att = jax.nn.softmax(att, axis=-1)
    out = jnp.einsum('bij,bjc->bic', att, v)
    out = out @ p['proj']['w'] + p['proj']['b']
    out = (x + out).reshape(Bn, H, W, C)
    return jnp.transpose(out, (0, 3, 1, 2))


# ---------------------------------------------------------------------------
# deterministic parameter init (1x1 convs stored as (Cin, Cout) matrices)
# ---------------------------------------------------------------------------
def make_params(key, C):
    keys = iter(jax.random.split(key, 16))
    nk = lambda: next(keys)

    def lin():
        return {'w': 0.1 * jax.random.normal(nk(), (C, C), jnp.float32),
                'b': 0.05 * jax.random.normal(nk(), (1, C), jnp.float32)}

    return {'norm': {'g': 1.0 + 0.05 * jax.random.normal(nk(), (1, C), jnp.float32),
                     'b': 0.05 * jax.random.normal(nk(), (1, C), jnp.float32)},
            'q': lin(), 'k': lin(), 'v': lin(), 'proj': lin()}


# ---------------------------------------------------------------------------
if __name__ == "__main__":
    key = jax.random.PRNGKey(0)
    pkey, xkey = jax.random.split(key)

    # small shapes: batch=2, channels=128 (GroupNorm(32) needs C % 32 == 0 and
    # C=128 keeps the lane dim dense), spatial 16x16 -> HW=256.
    Bn, C, H, W = 2, 128, 16, 16
    params = make_params(pkey, C)
    x = jax.random.normal(xkey, (Bn, C, H, W), jnp.float32)

    out = attn_block_pallas(x, params)
    out = jax.block_until_ready(out)

    ref = attn_block_ref(x, params)
    ref = jax.block_until_ready(ref)

    assert out.shape == (Bn, C, H, W), out.shape
    assert bool(jnp.all(jnp.isfinite(out)))
    max_err = float(jnp.max(jnp.abs(out - ref)))
    # matmuls run in bf16 (f32 accumulation); GN stats / softmax exp stay in f32.
    assert max_err < 1.5e-1, f"mismatch vs reference: {max_err}"

    print("KERNEL_OK")
</pallas_src>

<mosaic_0001>
module attributes {stable_mosaic.version = 11 : i64} {
  func.func @_gn_stats_kernel(%arg0: i32, %arg1: i32, %arg2: memref<1x128x256xf32, #tpu.memory_space<vmem>>, %arg3: memref<1x128x2xf32, #tpu.memory_space<vmem>>) attributes {dimension_semantics = [#tpu.dimension_semantics<parallel>, #tpu.dimension_semantics<arbitrary>], iteration_bounds = array<i64: 2, 1>, scalar_prefetch = 0 : i64, scratch_operands = 0 : i64, tpu.core_type = #tpu.core_type<tc>, window_params = [{transform_indices = @transform_0, window_bounds = array<i64: 1, 128, 256>}, {transform_indices = @transform_1, window_bounds = array<i64: 1, 128, 2>}]} {
    %c0_i32 = arith.constant 0 : i32
    %0 = arith.cmpi eq, %arg1, %c0_i32 : i32
    %1 = arith.extui %0 : i1 to i32
    %c0_i32_0 = arith.constant 0 : i32
    %2 = arith.cmpi ne, %1, %c0_i32_0 : i32
    scf.if %2 {
      %cst_10 = arith.constant 0.000000e+00 : f32
      %17 = vector.broadcast %cst_10 : f32 to vector<128x2xf32>
      %c0_11 = arith.constant 0 : index
      %c0_12 = arith.constant 0 : index
      %c0_13 = arith.constant 0 : index
      %18 = vector.load %arg3[%c0_11, %c0_12, %c0_13] : memref<1x128x2xf32, #tpu.memory_space<vmem>>, vector<1x128x2xf32>
      %19 = vector.shape_cast %18 : vector<1x128x2xf32> to vector<128x2xf32>
      %20 = vector.shape_cast %17 : vector<128x2xf32> to vector<1x128x2xf32>
      tpu.vector_store %arg3[%c0_11, %c0_12, %c0_13], %20 {strides = array<i32>} : memref<1x128x2xf32, #tpu.memory_space<vmem>>, vector<1x128x2xf32>,
    } else {
    }
    %c0 = arith.constant 0 : index
    %c0_1 = arith.constant 0 : index
    %c0_2 = arith.constant 0 : index
    %3 = vector.load %arg2[%c0, %c0_1, %c0_2] : memref<1x128x256xf32, #tpu.memory_space<vmem>>, vector<1x128x256xf32>
    %4 = vector.shape_cast %3 : vector<1x128x256xf32> to vector<128x256xf32>
    %cst = arith.constant dense<0.000000e+00> : vector<128xf32>
    %5 = vector.multi_reduction <add>, %4, %cst [1] : vector<128x256xf32> to vector<128xf32>
    %6 = vector.shape_cast %5 : vector<128xf32> to vector<128x1xf32>
    %7 = arith.mulf %4, %4 : vector<128x256xf32>
    %cst_3 = arith.constant dense<0.000000e+00> : vector<128xf32>
    %8 = vector.multi_reduction <add>, %7, %cst_3 [1] : vector<128x256xf32> to vector<128xf32>
    %9 = vector.shape_cast %8 : vector<128xf32> to vector<128x1xf32>
    %c0_4 = arith.constant 0 : index
    %c0_5 = arith.constant 0 : index
    %c0_6 = arith.constant 0 : index
    %10 = vector.load %arg3[%c0_4, %c0_5, %c0_6] : memref<1x128x2xf32, #tpu.memory_space<vmem>>, vector<1x128x2xf32>
    %11 = vector.shape_cast %10 : vector<1x128x2xf32> to vector<128x2xf32>
    %12 = tpu.concatenate %6, %9 in 1 : vector<128x1xf32>, vector<128x1xf32> -> vector<128x2xf32>
    %13 = arith.addf %11, %12 : vector<128x2xf32>
    %c0_7 = arith.constant 0 : index
    %c0_8 = arith.constant 0 : index
    %c0_9 = arith.constant 0 : index
    %14 = vector.load %arg3[%c0_7, %c0_8, %c0_9] : memref<1x128x2xf32, #tpu.memory_space<vmem>>, vector<1x128x2xf32>
    %15 = vector.shape_cast %14 : vector<1x128x2xf32> to vector<128x2xf32>
    %16 = vector.shape_cast %13 : vector<128x2xf32> to vector<1x128x2xf32>
    tpu.vector_store %arg3[%c0_7, %c0_8, %c0_9], %16 {strides = array<i32>} : memref<1x128x2xf32, #tpu.memory_space<vmem>>, vector<1x128x2xf32>,
    return
  }
  func.func @transform_0(%arg0: i32, %arg1: i32) -> (i32, i32, i32) {
    %c0_i32 = arith.constant 0 : i32
    %c0_i32_0 = arith.constant 0 : i32
    return %arg0, %c0_i32, %arg1 : i32, i32, i32
  }
  func.func @transform_1(%arg0: i32, %arg1: i32) -> (i32, i32, i32) {
    %c0_i32 = arith.constant 0 : i32
    %c0_i32_0 = arith.constant 0 : i32
    %c0_i32_1 = arith.constant 0 : i32
    return %arg0, %c0_i32, %c0_i32_0 : i32, i32, i32
  }
}

</mosaic_0001>

<bundles_post_ra>
// kernel: tpu_custom_call.1
= control target key start
LH: loop header
LB: loop body
LE: loop exit
PB: predicated region body
PF: predicated region fallthrough
CT: control target
= control target key end

     0   :  { %6 = vsyncpa [#allocation3], 0  ;;  %s1049_s0 = inlined_call_operand.hbm [shape: f32[2,128,256], index: 0, kind: input, shape index: {}]   ;;  %s1050_s1 = inlined_call_operand.vmem [shape: f32[2,128,2], index: 1, kind: output, shape index: {}]  }
   0x1   :  { %8 = vsyncpa [#allocation3 + $0x1], 0  ;;  %s648_s6 = smov 0   ;;  %s650_s7 = smov 0  }
   0x2   :  { %s652_s8 = smov 0   ;;  %s654_s9 = smov 0  }
   0x3   :  { %s656_s10 = smov 0   ;;  %s658_s11 = smov 0  }
   0x4 LB: > { %s479_s12 = sadd.s32 4294967295, %s632_s11   ;;  %s26_s13 = sadd.s32 1, %s628_s10  ;;  %s632_s11 = sphi %s658_s11, %s14_s11   ;;  %s628_s10 = sphi %s656_s10, %s1058_s10   ;;  %s624_s9 = sphi %s654_s9, %s1057_s9   ;;  %s620_s8 = sphi %s652_s8, %s1056_s8   ;;  %s616_s7 = sphi %s650_s7, %s1055_s7   ;;  %s612_s6 = sphi %s648_s6, %s1054_s6  }
   0x5   : > { %p28_p0 = scmp.ge.s32.totalorder %s26_s13, 2  ;;  %s35_s14 = sadd.s32 1, %s620_s8 }
   0x6   : > { %p42_p1 = scmp.ne.s32.totalorder %s620_s8, %s616_s7  ;;  %p43_p2 = scmp.eq.s32.totalorder %s632_s11, 0 }
   0x7   : > { %s1060_s13 = smov (%p28_p0, %s26_s13), 0  ;;  %p48_p4 = scmp.ne.s32.totalorder %s616_s7, %s612_s6 }
   0x8   : > { %p684_p3 = por %p43_p2, %p42_p1  ;;  %s30_s16 = ssub.s32 %s628_s10, %s1060_s13 }
   0x9   : > { %p49_p5 = scmp.eq.s32.totalorder %s479_s12, 0  ;;  %p33_p6 = scmp.eq.s32.totalorder %s30_s16, 0 }
   0xa   : > { %p500_p8 = scmp.lt.s32.totalorder %s632_s11, 2  ;;  %s98_s19 = sand.u32 1, %s620_s8  }
   0xb   : > { %p691_p7 = por %p49_p5, %p48_p4  ;;  %s492_s20 = sshll.u32 %s628_s10, 12 }
   0xc   : > { %s697_s18 = scalar_select %p33_p6, %s620_s8, %s35_s14  }
   0xd   : > { %s483_s21 = sshll.u32 %s98_s19, 8  ;;  %s704_s24 = scalar_lea.hbm %s1049_s0, %s492_s20 }
   0xe   : > { %s102_s25 = scalar_lea.vmem [#allocation2], %s483_s21  ;;  %p708_p9 = pnand %p500_p8, %p684_p3 }
   0xf   : > { %s111_s26 = sshll.u32 %s102_s25, 4  ;;  %s714_s28 = scalar_lea.sflag [#allocation3], %s98_s19  ;;  %s712_s26 = int_to_ptr.vmem [resolvable:$true] %s111_s26 }
  0x10   : > { %s552_s29 = scalar_lea.hbm %s704_s24, 4096  ;;  %p554_p11 = pneg %p708_p9 }
  0x11   : > { %p553_p10 = scmp.ne.s32.totalorder %s704_s24, %s552_s29  ;;  %s557_s3 = scalar_lea.hbm %s1049_s0, 8192 }
  0x12   : > { %p558_p0 = scmp.lt.u32.totalorder %s704_s24, %s1049_s0  ;;  %p559_p1 = scmp.lt.u32.totalorder %s557_s3, %s552_s29 }
  0x13   : > { %p555_p12 = pnand %p554_p11, %p553_p10  ;;  %p561_p3 = scmp.lt.u32.totalorder %s552_s29, %s704_s24 }
  0x14   : > { %p560_p2 = por %p559_p1, %p558_p0 }
  0x15   : > { %p556_p13 = pneg %p555_p12 }
  0x16   : > { %p562_p4 = por %p561_p3, %p560_p2 }
  0x18   : > { %p563_p5 = pnand %p562_p4, %p556_p13 }
  0x1a   : > { %566 = shalt.err (!%p563_p5)
}
  0x1b   : > { %s567_s6 = scalar_lea.vmem %s712_s26, 4096  ;;  %s634_s12 = smov [#allocation2]  }
  0x1c   : > { %p568_p6 = scmp.ne.s32.totalorder %s712_s26, %s567_s6  ;;  %s572_s14 = sshll.u32 %s634_s12, 4  ;;  %s573_s14 = int_to_ptr.vmem [resolvable:$false] %s572_s14 }
  0x1d   : > { %s574_s15 = scalar_lea.vmem %s573_s14, 8192  ;;  %p575_p12 = scmp.lt.s32.totalorder %s712_s26, %s573_s14 }
  0x1e   : > { %p570_p8 = pnand %p568_p6, %p554_p11  ;;  %p576_p0 = scmp.lt.s32.totalorder %s574_s15, %s567_s6 }
  0x20   : > { %p571_p10 = pneg %p570_p8  ;;  %p577_p1 = por %p576_p0, %p575_p12 }
  0x22   : > { %p578_p2 = pnand %p577_p1, %p571_p10 }
  0x24   : > { %581 = shalt.err (!%p578_p2)
}
  0x25   : > { %s635_s16 = smov 256   ;;  %s636_s19 = smov 16  }
  0x26   : > { %499 = dma.hbm_to_vmem [thread:$0]  (!%p708_p9), %s704_s24, 4096, %s712_s26, %s714_s28, %s635_s16, %s635_s16, %s636_s19  }
  0x27   : > { %p486_p11 = scmp.ge.s32.totalorder %s632_s11, 1  ;;  %p119_p13 = scmp.lt.s32.totalorder %s632_s11, 3 }
  0x29   : > { %p120_p3 = pnand %p486_p11, %p119_p13 }
  0x2a   : > { %s125_s20 = sand.u32 (!%p120_p3), 1, %s616_s7  }
  0x2b   : > { %123 = sbr.rel (%p120_p3) target bundleno = 261 (0x105), region = 24  ;;  %s487_s21 = sshll.u32 (!%p120_p3), %s125_s20, 8 }
  0x2c   : > { %s126_s22 = scalar_lea.sflag (!%p120_p3), [#allocation3], %s125_s20  ;;  %s745_s23 = scalar_lea.vmem (!%p120_p3), [#allocation2], %s487_s21 }
  0x32   : > { %607 = dma.done.wait (%p691_p7), %s126_s22, 4096  }
  0x33   : > { %609 = vsyncadd (%p691_p7), %s126_s22, 4294963200  ;;  %v752_v0 = vld [vmem:[%s745_s23 + $0x20] sm:$0xff]  ;;  %v755_v1 = vld [vmem:[%s745_s23 + $0x28] sm:$0xff]  ;;  %p149_p7 = scmp.lt.s32.totalorder %s624_s9, 1  ;;  %vm158_vm0 = vcmask 15360   ;;  %vm351_vm1 = vcmask 7168  }
  0x34   : > { %v175_v2 = vld [vmem:[%s745_s23] sm:$0xff]  ;;  %v213_v3 = vadd.f32 %v755_v1, %v752_v0  ;;  %v176_v4 = vld [vmem:[%s745_s23 + $0x8] sm:$0xff]  ;;  %v762_v5 = vld [vmem:[%s745_s23 + $0x30] sm:$0xff]  ;;  %v259_v55 = vmul.f32 %v752_v0, %v752_v0  ;;  %v260_v56 = vmul.f32 %v755_v1, %v755_v1 }
  0x35   : > { %v765_v6 = vld [vmem:[%s745_s23 + $0x38] sm:$0xff]  ;;  %v207_v7 = vadd.f32 %v176_v4, %v175_v2  ;;  %v177_v8 = vld [vmem:[%s745_s23 + $0x10] sm:$0xff]  ;;  %v774_v14 = vld [vmem:[%s745_s23 + $0x40] sm:$0xff]  ;;  %v255_v49 = vmul.f32 %v175_v2, %v175_v2  ;;  %v256_v50 = vmul.f32 %v176_v4, %v176_v4  ;;  %v261_v53 = vmul.f32 %v762_v5, %v762_v5  ;;  %s1062_s9 = smov (!%p149_p7, %s624_s9), 1 }
  0x36   : > { %v178_v9 = vld [vmem:[%s745_s23 + $0x18] sm:$0xff]  ;;  %214 = vadd.xlane.f32.xlu1 %v213_v3  ;;  %v216_v10 = vadd.f32 %v765_v6, %v762_v5  ;;  %v185_v12 = vld [vmem:[%s745_s23 + $0x50] sm:$0xff]  ;;  %v777_v15 = vld [vmem:[%s745_s23 + $0x48] sm:$0xff]  ;;  %v257_v47 = vmul.f32 %v177_v8, %v177_v8  ;;  %v262_v54 = vmul.f32 %v765_v6, %v765_v6  ;;  %v293_v61 = vadd.f32 %v260_v56, %v259_v55  ;;  %s493_s17 = sshll.u32 %s1062_s9, 7 }
  0x37   : > { %208 = vadd.xlane.f32.xlu0 %v207_v7  ;;  %v210_v11 = vadd.f32 %v178_v9, %v177_v8  ;;  %v186_v13 = vld [vmem:[%s745_s23 + $0x58] sm:$0xff]  ;;  %v219_v17 = vadd.f32 %v777_v15, %v774_v14  ;;  %v782_v18 = vld [vmem:[%s745_s23 + $0x70] sm:$0xff]  ;;  %v788_v20 = vld [vmem:[%s745_s23 + $0x60] sm:$0xff]  ;;  %v258_v48 = vmul.f32 %v178_v9, %v178_v9  ;;  %v287_v57 = vadd.f32 %v256_v50, %v255_v49  ;;  %s886_s26 = scalar_lea.vmem %s1050_s1, %s493_s17 }
  0x38   : > { %v222_v16 = vadd.f32 %v186_v13, %v185_v12  ;;  %v785_v19 = vld [vmem:[%s745_s23 + $0x78] sm:$0xff]  ;;  %v791_v21 = vld [vmem:[%s745_s23 + $0x68] sm:$0xff]  ;;  %v798_v24 = vld [vmem:[%s745_s23 + $0x90] sm:$0xff]  ;;  %v296_v58 = vadd.f32 %v262_v54, %v261_v53  ;;  %v265_v59 = vmul.f32 %v185_v12, %v185_v12  ;;  %v266_v60 = vmul.f32 %v186_v13, %v186_v13 }
  0x39   : > { %v228_v22 = vadd.f32 %v785_v19, %v782_v18  ;;  %v225_v23 = vadd.f32 %v791_v21, %v788_v20  ;;  %v801_v25 = vld [vmem:[%s745_s23 + $0x98] sm:$0xff]  ;;  %v804_v26 = vld [vmem:[%s745_s23 + $0x80] sm:$0xff]  ;;  %v807_v27 = vld [vmem:[%s745_s23 + $0x88] sm:$0xff]  ;;  %v290_v52 = vadd.f32 %v258_v48, %v257_v47  ;;  %v263_v62 = vmul.f32 %v774_v14, %v774_v14 }
  0x3a   : > { %217 = vadd.xlane.f32.xlu1 %v216_v10  ;;  %v234_v28 = vadd.f32 %v801_v25, %v798_v24  ;;  %v231_v29 = vadd.f32 %v807_v27, %v804_v26  ;;  %v814_v30 = vld [vmem:[%s745_s23 + $0xb0] sm:$0xff]  ;;  %v817_v31 = vld [vmem:[%s745_s23 + $0xb8] sm:$0xff]  ;;  %v820_v32 = vld [vmem:[%s745_s23 + $0xa0] sm:$0xff]  ;;  %v264_v63 = vmul.f32 %v777_v15, %v777_v15  ;;  %v302_v0 = vadd.f32 %v266_v60, %v265_v59 }
  0x3b   : > { %211 = vadd.xlane.f32.xlu0 %v210_v11  ;;  %v823_v33 = vld [vmem:[%s745_s23 + $0xa8] sm:$0xff]  ;;  %v240_v34 = vadd.f32 %v817_v31, %v814_v30  ;;  %v830_v36 = vld [vmem:[%s745_s23 + $0xd0] sm:$0xff]  ;;  %v833_v37 = vld [vmem:[%s745_s23 + $0xd8] sm:$0xff]  ;;  %v269_v1 = vmul.f32 %v782_v18, %v782_v18  ;;  %v270_v2 = vmul.f32 %v785_v19, %v785_v19  ;;  %v267_v4 = vmul.f32 %v788_v20, %v788_v20 }
  0x3c   : > { %v237_v35 = vadd.f32 %v823_v33, %v820_v32  ;;  %v836_v38 = vld [vmem:[%s745_s23 + $0xc0] sm:$0xff]  ;;  %v839_v39 = vld [vmem:[%s745_s23 + $0xc8] sm:$0xff]  ;;  %v246_v40 = vadd.f32 %v833_v37, %v830_v36  ;;  %v846_v42 = vld [vmem:[%s745_s23 + $0xf0] sm:$0xff]  ;;  %v299_v3 = vadd.f32 %v264_v63, %v263_v62  ;;  %v268_v5 = vmul.f32 %v791_v21, %v791_v21 }
  0x3d   : > { %v243_v41 = vadd.f32 %v839_v39, %v836_v38  ;;  %v849_v43 = vld [vmem:[%s745_s23 + $0xf8] sm:$0xff]  ;;  %v852_v44 = vld [vmem:[%s745_s23 + $0xe0] sm:$0xff]  ;;  %v855_v45 = vld [vmem:[%s745_s23 + $0xe8] sm:$0xff]  ;;  %v308_v6 = vadd.f32 %v270_v2, %v269_v1  ;;  %v273_v7 = vmul.f32 %v798_v24, %v798_v24  ;;  %v274_v8 = vmul.f32 %v801_v25, %v801_v25 }
  0x3e   : > { %223 = vadd.xlane.f32.xlu1 %v222_v16  ;;  %v252_v46 = vadd.f32 %v849_v43, %v846_v42  ;;  %v249_v51 = vadd.f32 %v855_v45, %v852_v44  ;;  %v637_v9 = vmov 0.0   ;;  %v305_v10 = vadd.f32 %v268_v5, %v267_v4 }
  0x3f   : > { %220 = vadd.xlane.f32.xlu0 %v219_v17  ;;  %160 = vst.msk [vmem:[%s886_s26 + $0x8] sm:$0xff] %vm158_vm0, %v637_v9  ;;  %159 = vst.msk [vmem:[%s886_s26] sm:$0xff] %vm158_vm0, %v637_v9  ;;  %v271_v11 = vmul.f32 %v804_v26, %v804_v26  ;;  %v272_v12 = vmul.f32 %v807_v27, %v807_v27  ;;  %v314_v13 = vadd.f32 %v274_v8, %v273_v7 }
  0x40   : > { %161 = vst.msk [vmem:[%s886_s26 + $0x10] sm:$0xff] %vm158_vm0, %v637_v9  ;;  %162 = vst.msk [vmem:[%s886_s26 + $0x18] sm:$0xff] %vm158_vm0, %v637_v9  ;;  %v277_v14 = vmul.f32 %v814_v30, %v814_v30  ;;  %v278_v15 = vmul.f32 %v817_v31, %v817_v31  ;;  %v275_v17 = vmul.f32 %v820_v32, %v820_v32 }
  0x41   : > { %163 = vst.msk [vmem:[%s886_s26 + $0x20] sm:$0xff] %vm158_vm0, %v637_v9  ;;  %164 = vst.msk [vmem:[%s886_s26 + $0x28] sm:$0xff] %vm158_vm0, %v637_v9  ;;  %v311_v16 = vadd.f32 %v272_v12, %v271_v11  ;;  %v276_v18 = vmul.f32 %v823_v33, %v823_v33  ;;  %v281_v20 = vmul.f32 %v830_v36, %v830_v36 }
  0x42   : > { %229 = vadd.xlane.f32.xlu1 %v228_v22  ;;  %165 = vst.msk [vmem:[%s886_s26 + $0x30] sm:$0xff] %vm158_vm0, %v637_v9  ;;  %166 = vst.msk [vmem:[%s886_s26 + $0x38] sm:$0xff] %vm158_vm0, %v637_v9  ;;  %v320_v19 = vadd.f32 %v278_v15, %v277_v14  ;;  %v282_v21 = vmul.f32 %v833_v37, %v833_v37  ;;  %v280_v24 = vmul.f32 %v839_v39, %v839_v39 }
  0x43   : > { %226 = vadd.xlane.f32.xlu0 %v225_v23  ;;  %167 = vst.msk [vmem:[%s886_s26 + $0x40] sm:$0xff] %vm158_vm0, %v637_v9  ;;  %168 = vst.msk [vmem:[%s886_s26 + $0x48] sm:$0xff] %vm158_vm0, %v637_v9  ;;  %v317_v22 = vadd.f32 %v276_v18, %v275_v17  ;;  %v279_v23 = vmul.f32 %v836_v38, %v836_v38  ;;  %v285_v26 = vmul.f32 %v846_v42, %v846_v42 }
  0x44   : > { %169 = vst.msk [vmem:[%s886_s26 + $0x50] sm:$0xff] %vm158_vm0, %v637_v9  ;;  %170 = vst.msk [vmem:[%s886_s26 + $0x58] sm:$0xff] %vm158_vm0, %v637_v9  ;;  %v326_v25 = vadd.f32 %v282_v21, %v281_v20  ;;  %v286_v27 = vmul.f32 %v849_v43, %v849_v43  ;;  %v284_v30 = vmul.f32 %v855_v45, %v855_v45 }
  0x45   : > { %171 = vst.msk [vmem:[%s886_s26 + $0x60] sm:$0xff] %vm158_vm0, %v637_v9  ;;  %172 = vst.msk [vmem:[%s886_s26 + $0x68] sm:$0xff] %vm158_vm0, %v637_v9 }
  0x46   : > { %235 = vadd.xlane.f32.xlu1 %v234_v28  ;;  %173 = vst.msk [vmem:[%s886_s26 + $0x70] sm:$0xff] %vm158_vm0, %v637_v9  ;;  %174 = vst.msk [vmem:[%s886_s26 + $0x78] sm:$0xff] %vm158_vm0, %v637_v9  ;;  %v323_v28 = vadd.f32 %v280_v24, %v279_v23  ;;  %v332_v31 = vadd.f32 %v286_v27, %v285_v26  ;;  %v336_v49 = vld [vmem:[%s886_s26 + $0x8] sm:$0xff] }
  0x47   : > { %232 = vadd.xlane.f32.xlu0 %v231_v29  ;;  %v283_v29 = vmul.f32 %v852_v44, %v852_v44  ;;  %v337_v59 = vld [vmem:[%s886_s26 + $0x10] sm:$0xff] }
  0x48   : > { %v340_v1 = vld [vmem:[%s886_s26 + $0x28] sm:$0xff] }
  0x49   : > { %v329_v32 = vadd.f32 %v284_v30, %v283_v29  ;;  %v342_v9 = vld [vmem:[%s886_s26 + $0x38] sm:$0xff]  ;;  %v341_v11 = vld [vmem:[%s886_s26 + $0x30] sm:$0xff] }
  0x4a   : > { %241 = vadd.xlane.f32.xlu1 %v240_v34  ;;  %v344_v17 = vld [vmem:[%s886_s26 + $0x48] sm:$0xff] }
  0x4b   : > { %238 = vadd.xlane.f32.xlu0 %v237_v35  ;;  %v345_v27 = vld [vmem:[%s886_s26 + $0x50] sm:$0xff] }
  0x4e   : > { %247 = vadd.xlane.f32.xlu1 %v246_v40 }
  0x4f   : > { %244 = vadd.xlane.f32.xlu0 %v243_v41 }
  0x52   : > { %253 = vadd.xlane.f32.xlu1 %v252_v46 }
  0x53   : > { %250 = vadd.xlane.f32.xlu0 %v249_v51  ;;  %v335_v51 = vld [vmem:[%s886_s26] sm:$0xff] }
  0x56   : > { %291 = vadd.xlane.f32.xlu1 %v290_v52 }
  0x57   : > { %288 = vadd.xlane.f32.xlu0 %v287_v57  ;;  %v338_v57 = vld [vmem:[%s886_s26 + $0x18] sm:$0xff] }
  0x5a   : > { %297 = vadd.xlane.f32.xlu1 %v296_v58 }
  0x5b   : > { %294 = vadd.xlane.f32.xlu0 %v293_v61 }
  0x5e   : > { %303 = vadd.xlane.f32.xlu1 %v302_v0 }
  0x5f   : > { %300 = vadd.xlane.f32.xlu0 %v299_v3  ;;  %v339_v3 = vld [vmem:[%s886_s26 + $0x20] sm:$0xff] }
  0x62   : > { %309 = vadd.xlane.f32.xlu1 %v308_v6 }
  0x63   : > { %306 = vadd.xlane.f32.xlu0 %v305_v10 }
  0x66   : > { %315 = vadd.xlane.f32.xlu1 %v314_v13 }
  0x67   : > { %312 = vadd.xlane.f32.xlu0 %v311_v16 }
  0x6a   : > { %321 = vadd.xlane.f32.xlu1 %v320_v19  ;;  %v343_v19 = vld [vmem:[%s886_s26 + $0x40] sm:$0xff] }
  0x6b   : > { %318 = vadd.xlane.f32.xlu0 %v317_v22 }
  0x6e   : > { %327 = vadd.xlane.f32.xlu1 %v326_v25  ;;  %v346_v25 = vld [vmem:[%s886_s26 + $0x58] sm:$0xff] }
  0x6f   : > { %324 = vadd.xlane.f32.xlu0 %v323_v28 }
  0x72   : > { %333 = vadd.xlane.f32.xlu1 %v332_v31 }
  0x73   : > { %330 = vadd.xlane.f32.xlu0 %v329_v32 }
  0xc3   : > { %v215_v33 = vpop.xlane.xlu1 %214 }
  0xc4   : > { %v209_v34 = vpop.xlane.xlu0 %208 }
  0xc7   : > { %v218_v35 = vpop.xlane.xlu1 %217 }
  0xc8   : > { %v212_v36 = vpop.xlane.xlu0 %211 }
  0xcb   : > { %v224_v37 = vpop.xlane.xlu1 %223 }
  0xcc   : > { %v221_v38 = vpop.xlane.xlu0 %220 }
  0xcf   : > { %v230_v39 = vpop.xlane.xlu1 %229 }
  0xd0   : > { %v227_v40 = vpop.xlane.xlu0 %226 }
  0xd3   : > { %v236_v41 = vpop.xlane.xlu1 %235 }
  0xd4   : > { %v233_v42 = vpop.xlane.xlu0 %232 }
  0xd7   : > { %v242_v43 = vpop.xlane.xlu1 %241 }
  0xd8   : > { %v952_v44 = vpop.xlane.xlu0 %238 }
  0xdb   : > { %v954_v45 = vpop.xlane.xlu1 %247 }
  0xdc   : > { %v956_v46 = vpop.xlane.xlu0 %244 }
  0xdf   : > { %v958_v47 = vpop.xlane.xlu1 %253 }
  0xe0   : > { %v960_v48 = vpop.xlane.xlu0 %250 }
  0xe3   : > { %v292_v50 = vpop.xlane.xlu1 %291 }
  0xe4   : > { %v353_v52 = vsel %vm351_vm1, %v212_v36, %v292_v50  ;;  %v289_v53 = vpop.xlane.xlu0 %288 }
  0xe5   : > { %v369_v54 = vadd.f32 %v353_v52, %v336_v49  ;;  %v352_v55 = vsel %vm351_vm1, %v209_v34, %v289_v53 }
  0xe6   : > { %v368_v56 = vadd.f32 %v352_v55, %v335_v51 }
  0xe7   : > { %386 = vst.msk [vmem:[%s886_s26 + $0x8] sm:$0xff] %vm158_vm0, %v369_v54  ;;  %v298_v58 = vpop.xlane.xlu1 %297 }
  0xe8   : > { %385 = vst.msk [vmem:[%s886_s26] sm:$0xff] %vm158_vm0, %v368_v56  ;;  %v355_v60 = vsel %vm351_vm1, %v218_v35, %v298_v58  ;;  %v295_v61 = vpop.xlane.xlu0 %294  ;;  %v347_v35 = vld [vmem:[%s886_s26 + $0x60] sm:$0xff] }
  0xe9   : > { %v371_v62 = vadd.f32 %v355_v60, %v338_v57  ;;  %v354_v63 = vsel %vm351_vm1, %v215_v33, %v295_v61  ;;  %v348_v33 = vld [vmem:[%s886_s26 + $0x68] sm:$0xff] }
  0xea   : > { %v370_v0 = vadd.f32 %v354_v63, %v337_v59 }
  0xeb   : > { %388 = vst.msk [vmem:[%s886_s26 + $0x18] sm:$0xff] %vm158_vm0, %v371_v62  ;;  %v304_v2 = vpop.xlane.xlu1 %303 }
  0xec   : > { %387 = vst.msk [vmem:[%s886_s26 + $0x10] sm:$0xff] %vm158_vm0, %v370_v0  ;;  %v357_v4 = vsel %vm351_vm1, %v224_v37, %v304_v2  ;;  %v301_v5 = vpop.xlane.xlu0 %300 }
  0xed   : > { %v373_v6 = vadd.f32 %v357_v4, %v340_v1  ;;  %v356_v7 = vsel %vm351_vm1, %v221_v38, %v301_v5 }
  0xee   : > { %v372_v8 = vadd.f32 %v356_v7, %v339_v3 }
  0xef   : > { %390 = vst.msk [vmem:[%s886_s26 + $0x28] sm:$0xff] %vm158_vm0, %v373_v6  ;;  %v310_v10 = vpop.xlane.xlu1 %309 }
  0xf0   : > { %389 = vst.msk [vmem:[%s886_s26 + $0x20] sm:$0xff] %vm158_vm0, %v372_v8  ;;  %v359_v12 = vsel %vm351_vm1, %v230_v39, %v310_v10  ;;  %v307_v13 = vpop.xlane.xlu0 %306 }
  0xf1   : > { %v375_v14 = vadd.f32 %v359_v12, %v342_v9  ;;  %v358_v15 = vsel %vm351_vm1, %v227_v40, %v307_v13 }
  0xf2   : > { %v374_v16 = vadd.f32 %v358_v15, %v341_v11 }
  0xf3   : > { %392 = vst.msk [vmem:[%s886_s26 + $0x38] sm:$0xff] %vm158_vm0, %v375_v14  ;;  %v316_v18 = vpop.xlane.xlu1 %315 }
  0xf4   : > { %391 = vst.msk [vmem:[%s886_s26 + $0x30] sm:$0xff] %vm158_vm0, %v374_v16  ;;  %v361_v20 = vsel %vm351_vm1, %v236_v41, %v316_v18  ;;  %v313_v21 = vpop.xlane.xlu0 %312  ;;  %v350_v41 = vld [vmem:[%s886_s26 + $0x78] sm:$0xff] }
  0xf5   : > { %v377_v22 = vadd.f32 %v361_v20, %v344_v17  ;;  %v360_v23 = vsel %vm351_vm1, %v233_v42, %v313_v21 }
  0xf6   : > { %v376_v24 = vadd.f32 %v360_v23, %v343_v19 }
  0xf7   : > { %394 = vst.msk [vmem:[%s886_s26 + $0x48] sm:$0xff] %vm158_vm0, %v377_v22  ;;  %v322_v26 = vpop.xlane.xlu1 %321 }
  0xf8   : > { %393 = vst.msk [vmem:[%s886_s26 + $0x40] sm:$0xff] %vm158_vm0, %v376_v24  ;;  %v363_v28 = vsel %vm351_vm1, %v242_v43, %v322_v26  ;;  %v319_v29 = vpop.xlane.xlu0 %318  ;;  %v349_v43 = vld [vmem:[%s886_s26 + $0x70] sm:$0xff] }
  0xf9   : > { %v379_v30 = vadd.f32 %v363_v28, %v346_v25  ;;  %v362_v31 = vsel %vm351_vm1, %v952_v44, %v319_v29 }
  0xfa   : > { %v378_v32 = vadd.f32 %v362_v31, %v345_v27 }
  0xfb   : > { %396 = vst.msk [vmem:[%s886_s26 + $0x58] sm:$0xff] %vm158_vm0, %v379_v30  ;;  %v328_v34 = vpop.xlane.xlu1 %327 }
  0xfc   : > { %395 = vst.msk [vmem:[%s886_s26 + $0x50] sm:$0xff] %vm158_vm0, %v378_v32  ;;  %v365_v36 = vsel %vm351_vm1, %v954_v45, %v328_v34  ;;  %v325_v37 = vpop.xlane.xlu0 %324 }
  0xfd   : > { %v381_v38 = vadd.f32 %v365_v36, %v348_v33  ;;  %v364_v39 = vsel %vm351_vm1, %v956_v46, %v325_v37 }
  0xfe   : > { %v380_v40 = vadd.f32 %v364_v39, %v347_v35 }
  0xff   : > { %398 = vst.msk [vmem:[%s886_s26 + $0x68] sm:$0xff] %vm158_vm0, %v381_v38  ;;  %v334_v42 = vpop.xlane.xlu1 %333 }
 0x100   : > { %397 = vst.msk [vmem:[%s886_s26 + $0x60] sm:$0xff] %vm158_vm0, %v380_v40  ;;  %v367_v44 = vsel %vm351_vm1, %v958_v47, %v334_v42  ;;  %v331_v49 = vpop.xlane.xlu0 %330 }
 0x101   : > { %v383_v50 = vadd.f32 %v367_v44, %v350_v41  ;;  %v366_v45 = vsel %vm351_vm1, %v960_v48, %v331_v49 }
 0x102   : > { %v382_v51 = vadd.f32 %v366_v45, %v349_v43 }
 0x103   : > { %400 = vst.msk [vmem:[%s886_s26 + $0x78] sm:$0xff] %vm158_vm0, %v383_v50 }
 0x104   : > { %399 = vst.msk [vmem:[%s886_s26 + $0x70] sm:$0xff] %vm158_vm0, %v382_v51 }
 0x105 PF: > { %s14_s11 = sadd.s32 1, %s632_s11   ;;  %s1054_s6 = smov %s616_s7 }
 0x106   : > { %p11_p9 = scmp.ge.s32.totalorder %s14_s11, 4   ;;  %s1055_s7 = smov %s620_s8 }
 0x107   : > { %s1056_s8 = smov %s697_s18  ;;  %s1057_s9 = smov %s628_s10 }
 0x108   : > { %s1058_s10 = smov %s1060_s13  ;;  %13 = sbr.rel (!%p11_p9) target bundleno = 4 (0x4), region = 68 }
 0x10f   :  { %422 = vsyncpa [#allocation3], 1 }
 0x110   :  { %424 = vsyncpa [#allocation3 + $0x1], 1 }

</bundles_post_ra>
